<compile_context>
chip_gen: v6e
topology: v6e:2x2x1
jax: 0.10.0
libtpu: 0.0.40
codegen_flags: <defaults>
</compile_context>

<pallas_src>
import functools

import jax
import jax.numpy as jnp
from jax.experimental import pallas as pl
from jax.experimental.pallas import tpu as pltpu


def _round_up(v, m):
    return ((v + m - 1) // m) * m


def _predictor_kernel(x_ref, w_ref, b_ref, out_ref):
    # Cast activations to the packed-weight dtype in-kernel (VPU, hidden under
    # the pipeline); one fused MXU matmul per N-tile, f32 accumulation.
    x = x_ref[...].astype(w_ref.dtype)
    acc = jnp.dot(x, w_ref[...], preferred_element_type=jnp.float32)
    out_ref[...] = (acc + b_ref[...]).astype(out_ref.dtype)


def prepare_predictor_params(w_cls, b_cls, w_bbox, b_bbox, dtype=jnp.bfloat16):
    """One-time parameter packing. Call at init time, NOT per forward.

    w_cls:  (num_classes, C)      b_cls:  (num_classes,)
    w_bbox: (num_classes*4, C)    b_bbox: (num_classes*4,)

    The two heads are fused into ONE pre-transposed (C, out_pad) weight with
    each head padded to its own 128-lane boundary:
        cols [0, 128*ceil(nc/128))                    -> cls_score head
        cols [cls_pad, cls_pad + 128*ceil(4*nc/128))  -> bbox_pred head
    so both post-kernel slices start lane-aligned. Padding columns are zero.
    Bias is kept f32 regardless of `dtype` so the f32 accumulator is exact.

    dtype=jnp.bfloat16 (default) -> bf16 MXU fast path on v5e/v6e/v7x.
    dtype=jnp.float32 -> bit-exact f32 path.
    """
    nc, c = w_cls.shape
    nb, c2 = w_bbox.shape
    assert c == c2, "in_channels mismatch between cls and bbox heads"
    cls_pad = max(128, _round_up(nc, 128))
    bbox_pad = max(128, _round_up(nb, 128))
    out_pad = cls_pad + bbox_pad

    w_fused = jnp.zeros((c, out_pad), dtype=dtype)
    w_fused = w_fused.at[:, :nc].set(w_cls.T.astype(dtype))
    w_fused = w_fused.at[:, cls_pad:cls_pad + nb].set(w_bbox.T.astype(dtype))

    b_fused = jnp.zeros((1, out_pad), dtype=jnp.float32)
    b_fused = b_fused.at[:, :nc].set(b_cls.astype(jnp.float32))
    b_fused = b_fused.at[:, cls_pad:cls_pad + nb].set(b_bbox.astype(jnp.float32))
    return w_fused, b_fused


@functools.partial(jax.jit,
                   static_argnames=("num_classes", "out_dtype", "max_tile_n"))
def faster_rcnn_predictor(x, w_fused, b_fused, *, num_classes,
                          out_dtype=jnp.float32, max_tile_n=512):
    """Semantics of FasterRCNNPredictor.forward.

    x: (N, C) or (N, C, 1, 1); any float dtype (in-kernel cast to w dtype).
    w_fused/b_fused: packed params from prepare_predictor_params.
    Returns (scores (N, num_classes), bbox_deltas (N, num_classes*4)) in
    `out_dtype` (f32 by default -> MXU accumulator is not downcast).
    """
    if x.ndim == 4:
        assert x.shape[2] == 1 and x.shape[3] == 1, "spatial dims must be [1,1]"
    x2 = x.reshape(x.shape[0], -1)                       # flatten(start_dim=1)

    n, c = x2.shape
    c_w, out_pad = w_fused.shape
    assert c == c_w, "in_channels mismatch between x and packed weights"
    cls_pad = max(128, _round_up(num_classes, 128))
    nb = num_classes * 4
    assert out_pad >= cls_pad + nb, "packed weights do not match num_classes"

    x_itemsize = jnp.dtype(x2.dtype).itemsize
    w_itemsize = jnp.dtype(w_fused.dtype).itemsize
    o_itemsize = jnp.dtype(out_dtype).itemsize

    # Pad N only to the sublane multiple of x's dtype (8 f32, 16 bf16, 32 i8).
    sublane = max(8, 32 // x_itemsize)
    n_pad = _round_up(n, sublane)
    if n_pad != n:
        x2 = jnp.pad(x2, ((0, n_pad - n), (0, 0)))

    # Tile over N: aim for >= 2 grid steps (v7x: 2 TensorCores) while capping
    # the per-tile footprint; Pallas handles the ragged final block.
    cap = max(sublane, (max_tile_n // sublane) * sublane)
    tile_n = max(sublane, min(cap, _round_up(pl.cdiv(n_pad, 2), sublane)))
    grid = (pl.cdiv(n_pad, tile_n),)

    # VMEM budget: x/out tiles double-buffered, params resident single-buffered.
    vmem_est = (2 * tile_n * c * x_itemsize
                + 2 * tile_n * out_pad * o_itemsize
                + c * out_pad * w_itemsize
                + out_pad * 4)
    vmem_limit = None
    if 2 * vmem_est > 32 * 1024 * 1024:          # above default scoped limit
        vmem_limit = min(64 * 1024 * 1024, 2 * vmem_est)   # stay inside v7x VMEM

    cost = pl.CostEstimate(
        flops=2 * n_pad * c * out_pad,
        transcendentals=0,
        bytes_accessed=(n_pad * c * x_itemsize + c * out_pad * w_itemsize
                        + out_pad * 4 + n_pad * out_pad * o_itemsize),
    )

    out = pl.pallas_call(
        _predictor_kernel,
        out_shape=jax.ShapeDtypeStruct((n_pad, out_pad), out_dtype),
        grid_spec=pltpu.PrefetchScalarGridSpec(
            num_scalar_prefetch=0,
            grid=grid,
            in_specs=[
                # x tile: default double-buffering -> DMA overlaps the MXU.
                pl.BlockSpec((tile_n, c), lambda i: (i, 0)),
                # Fused weight: constant index_map -> resident, single buffer.
                pl.BlockSpec((c, out_pad), lambda i: (0, 0),
                             pipeline_mode=pl.Buffered(1)),
                # Fused f32 bias: resident, single buffer.
                pl.BlockSpec((1, out_pad), lambda i: (0, 0),
                             pipeline_mode=pl.Buffered(1)),
            ],
            out_specs=pl.BlockSpec((tile_n, out_pad), lambda i: (i, 0)),
        ),
        compiler_params=pltpu.CompilerParams(
            dimension_semantics=("parallel",),
            vmem_limit_bytes=vmem_limit,
        ),
        cost_estimate=cost,
    )(x2, w_fused, b_fused)

    scores = out[:n, :num_classes]                       # lane-aligned slice
    bbox_deltas = out[:n, cls_pad:cls_pad + nb]          # lane-aligned slice
    return scores, bbox_deltas


if __name__ == "__main__":
    # Small shapes consistent with the module: batch=8, in_channels=32,
    # num_classes=8 -> bbox_pred out = 32. Input given as NCHW (N, C, 1, 1).
    key = jax.random.PRNGKey(0)
    k_x, k_wc, k_bc, k_wb, k_bb = jax.random.split(key, 5)

    N, C, NUM_CLASSES = 8, 32, 8

    x = jax.random.normal(k_x, (N, C, 1, 1), dtype=jnp.float32)
    w_cls = jax.random.normal(k_wc, (NUM_CLASSES, C), dtype=jnp.float32) * 0.02
    b_cls = jax.random.normal(k_bc, (NUM_CLASSES,), dtype=jnp.float32) * 0.02
    w_bbox = jax.random.normal(k_wb, (NUM_CLASSES * 4, C), dtype=jnp.float32) * 0.02
    b_bbox = jax.random.normal(k_bb, (NUM_CLASSES * 4,), dtype=jnp.float32) * 0.02

    # Plain-JAX reference of the PyTorch forward (f32).
    x_flat = x.reshape(N, -1)
    scores_ref = x_flat @ w_cls.T + b_cls
    bbox_ref = x_flat @ w_bbox.T + b_bbox

    # --- f32 packing: bit-exact path ---------------------------------------
    w_f32, b_f32 = prepare_predictor_params(
        w_cls, b_cls, w_bbox, b_bbox, dtype=jnp.float32)
    scores, bbox_deltas = faster_rcnn_predictor(
        x, w_f32, b_f32, num_classes=NUM_CLASSES)
    jax.block_until_ready((scores, bbox_deltas))
    assert scores.shape == (N, NUM_CLASSES)
    assert bbox_deltas.shape == (N, NUM_CLASSES * 4)
    assert jnp.allclose(scores, scores_ref, atol=1e-5)
    assert jnp.allclose(bbox_deltas, bbox_ref, atol=1e-5)

    # --- bf16 packing: deployment fast path (f32 accumulate, f32 output) ----
    w_bf16, b_bf16 = prepare_predictor_params(
        w_cls, b_cls, w_bbox, b_bbox, dtype=jnp.bfloat16)
    scores_b, bbox_b = faster_rcnn_predictor(
        x, w_bf16, b_bf16, num_classes=NUM_CLASSES)
    jax.block_until_ready((scores_b, bbox_b))
    assert scores_b.dtype == jnp.float32 and bbox_b.dtype == jnp.float32
    assert jnp.allclose(scores_b, scores_ref, atol=1e-2, rtol=1e-2)
    assert jnp.allclose(bbox_b, bbox_ref, atol=1e-2, rtol=1e-2)

    print("KERNEL_OK")
</pallas_src>

<mosaic_0001>
module attributes {stable_mosaic.version = 11 : i64} {
  func.func @_predictor_kernel(%arg0: i32, %arg1: memref<8x32xf32, #tpu.memory_space<vmem>>, %arg2: memref<32x256xf32, #tpu.memory_space<vmem>>, %arg3: memref<1x256xf32, #tpu.memory_space<vmem>>, %arg4: memref<8x256xf32, #tpu.memory_space<vmem>>) attributes {dimension_semantics = [#tpu.dimension_semantics<parallel>], iteration_bounds = array<i64: 1>, scalar_prefetch = 0 : i64, scratch_operands = 0 : i64, tpu.core_type = #tpu.core_type<tc>, window_params = [{transform_indices = @transform_0, window_bounds = array<i64: 8, 32>}, {pipeline_mode = #tpu.pipeline_mode<synchronous>, transform_indices = @transform_1, window_bounds = array<i64: 32, 256>}, {pipeline_mode = #tpu.pipeline_mode<synchronous>, transform_indices = @transform_2, window_bounds = array<i64: 1, 256>}, {transform_indices = @transform_3, window_bounds = array<i64: 8, 256>}]} {
    %c0 = arith.constant 0 : index
    %c0_0 = arith.constant 0 : index
    %0 = vector.load %arg1[%c0, %c0_0] : memref<8x32xf32, #tpu.memory_space<vmem>>, vector<8x32xf32>
    %c0_1 = arith.constant 0 : index
    %c0_2 = arith.constant 0 : index
    %1 = vector.load %arg2[%c0_1, %c0_2] : memref<32x256xf32, #tpu.memory_space<vmem>>, vector<32x256xf32>
    %cst = arith.constant dense<0.000000e+00> : vector<8x256xf32>
    %2 = tpu.matmul %0, %1, %cst {dimension_numbers = #tpu.dot_dimension_numbers<[1], [0], [0], [1], [0, 0, 1, 1], [], []>} : vector<8x32xf32>, vector<32x256xf32>, vector<8x256xf32> -> vector<8x256xf32>
    %c0_3 = arith.constant 0 : index
    %c0_4 = arith.constant 0 : index
    %3 = vector.load %arg3[%c0_3, %c0_4] : memref<1x256xf32, #tpu.memory_space<vmem>>, vector<1x256xf32>
    %4 = vector.broadcast %3 : vector<1x256xf32> to vector<8x256xf32>
    %5 = arith.addf %2, %4 : vector<8x256xf32>
    %c0_5 = arith.constant 0 : index
    %c0_6 = arith.constant 0 : index
    %6 = vector.load %arg4[%c0_5, %c0_6] : memref<8x256xf32, #tpu.memory_space<vmem>>, vector<8x256xf32>
    tpu.vector_store %arg4[%c0_5, %c0_6], %5 {strides = array<i32>} : memref<8x256xf32, #tpu.memory_space<vmem>>, vector<8x256xf32>,
    return
  }
  func.func @transform_0(%arg0: i32) -> (i32, i32) {
    %c0_i32 = arith.constant 0 : i32
    %c0_i32_0 = arith.constant 0 : i32
    return %arg0, %c0_i32 : i32, i32
  }
  func.func @transform_1(%arg0: i32) -> (i32, i32) {
    %c0_i32 = arith.constant 0 : i32
    %c0_i32_0 = arith.constant 0 : i32
    %c0_i32_1 = arith.constant 0 : i32
    return %c0_i32, %c0_i32_0 : i32, i32
  }
  func.func @transform_2(%arg0: i32) -> (i32, i32) {
    %c0_i32 = arith.constant 0 : i32
    %c0_i32_0 = arith.constant 0 : i32
    %c0_i32_1 = arith.constant 0 : i32
    return %c0_i32, %c0_i32_0 : i32, i32
  }
  func.func @transform_3(%arg0: i32) -> (i32, i32) {
    %c0_i32 = arith.constant 0 : i32
    %c0_i32_0 = arith.constant 0 : i32
    return %arg0, %c0_i32 : i32, i32
  }
}

</mosaic_0001>

<bundles_post_ra>
// kernel: faster_rcnn_predictor.1
= control target key start
LH: loop header
LB: loop body
LE: loop exit
PB: predicated region body
PF: predicated region fallthrough
CT: control target
= control target key end

     0   :  { %8 = vsyncpa [#allocation3], 0  ;;  %s234_s0 = inlined_call_operand.hbm [shape: f32[8,32], index: 0, kind: input, shape index: {}]   ;;  %s235_s1 = inlined_call_operand.hbm [shape: f32[32,256], index: 1, kind: input, shape index: {}]   ;;  %s236_s2 = inlined_call_operand.vmem [shape: f32[1,256], index: 2, kind: input, shape index: {}]   ;;  %s237_s3 = inlined_call_operand.vmem [shape: f32[8,256], index: 3, kind: output, shape index: {}]  }
   0x1   :  { %9 = vsyncpa [#allocation5], 0  ;;  %s194_s12 = smov [#allocation2]   ;;  %s195_s14 = smov [#allocation4]  }
   0x2   :  { %s16_s13 = sshll.u32 %s194_s12, 4  ;;  %s25_s15 = sshll.u32 %s195_s14, 4  ;;  %s17_s13 = int_to_ptr.vmem [resolvable:$true] %s16_s13  ;;  %s26_s15 = int_to_ptr.vmem [resolvable:$true] %s25_s15 }
   0x3   :  { %s158_s16 = scalar_lea.vmem %s17_s13, 128  ;;  %p163_p1 = scmp.lt.s32.totalorder %s17_s13, %s17_s13 }
   0x4   :  { %p159_p0 = scmp.ne.s32.totalorder %s17_s13, %s158_s16  ;;  %p164_p2 = scmp.lt.s32.totalorder %s158_s16, %s158_s16 }
   0x6   :  { %p165_p3 = por %p164_p2, %p163_p1 }
   0x8   :  { %p166_p4 = pnand %p165_p3, %p159_p0 }
   0xa   :  { %169 = shalt.err (!%p166_p4)
}
   0xb   :  { %19 = dma.hbm_to_vmem [thread:$0]  %s234_s0, 128, %s17_s13, [#allocation3]  }
   0xc   :  { %s178_s19 = scalar_lea.vmem %s26_s15, 1024  ;;  %p183_p6 = scmp.lt.s32.totalorder %s26_s15, %s26_s15 }
   0xd   :  { %p179_p5 = scmp.ne.s32.totalorder %s26_s15, %s178_s19  ;;  %p184_p7 = scmp.lt.s32.totalorder %s178_s19, %s178_s19 }
   0xf   :  { %p185_p8 = por %p184_p7, %p183_p6 }
  0x11   :  { %p186_p9 = pnand %p185_p8, %p179_p5 }
  0x13   :  { %189 = shalt.err (!%p186_p9)
}
  0x14   :  { %s196_s20 = smov 256   ;;  %s197_s21 = smov 16  }
  0x15   :  { %31 = dma.hbm_to_vmem [thread:$0]  %s235_s1, 1024, %s26_s15, [#allocation5], %s196_s20, %s196_s20, %s197_s21  }
  0x16   :  { %190 = dma.done.wait [#allocation3], 128  }
  0x17   :  { %191 = vsyncadd [#allocation3], 4294967168 }
  0x18   :  { %192 = dma.done.wait [#allocation5], 1024  }
  0x19   :  { %193 = vsyncadd [#allocation5], 4294966272  ;;  %v198_v0 = vmov 0.0   ;;  %v48_v1 = vld [vmem:[#allocation4 + $0x38] sm:$0xff]  ;;  %v47_v2 = vld [vmem:[#allocation4 + $0x30] sm:$0xff]  ;;  %vm61_vm0 = vcmask 261120   ;;  %v51_v10 = vlaneseq }
  0x1a   :  { %129 = vmatprep.mubr.f32.mxu0 %v198_v0  ;;  %v46_v3 = vld [vmem:[#allocation4 + $0x28] sm:$0xff]  ;;  %89 = vmatprep.subr.mxu0 %v48_v1  ;;  %v45_v4 = vld [vmem:[#allocation4 + $0x20] sm:$0xff]  ;;  %v44_v5 = vld [vmem:[#allocation4 + $0x18] sm:$0xff] }
  0x1b   :  { %90 = vmatpush1.msra.mxu0 %v47_v2  ;;  %v43_v6 = vld [vmem:[#allocation4 + $0x10] sm:$0xff]  ;;  %v42_v7 = vld [vmem:[#allocation4 + $0x8] sm:$0xff]  ;;  %v41_v8 = vld [vmem:[#allocation4] sm:$0xff]  ;;  %v52_v11 = vshrl.u32 %v51_v10, 7 }
  0x1c   :  { %91 = vmatprep.subr.mxu0 %v46_v3  ;;  %v40_v9 = vld [vmem:[#allocation2] sm:$0xff] }
  0x1d   :  { %92 = vmatpush1.msra.mxu0 %v45_v4  ;;  %v53_v12 = vsub.s32 0, %v52_v11  ;;  %v49_v13 = vld [vmem:[%s236_s2] sm:$0x3]  ;;  %v57_v14 = vsub.s32 1, %v52_v11 }
  0x1e   :  { %93 = vmatprep.subr.mxu0 %v44_v5 }
  0x1f   :  { %94 = vmatpush1.msra.mxu0 %v43_v6  ;;  %v54_v15 = vrot.slane %v49_v13, %v53_v12  ;;  %v58_v16 = vrot.slane %v49_v13, %v57_v14 }
  0x20   :  { %95 = vmatprep.subr.mxu0 %v42_v7 }
  0x21   :  { %96 = vmatpush1.msra.mxu0 %v41_v8 }
  0x22   :  { %144 = vmatmul.mubr.msk.f32.vlgmr.msra.gmra.mxu0 %vm61_vm0, %v40_v9 }
  0xe2   :  { %v131_v17 = vpop.f32.mrf.mxu0 }
  0xe3   :  { %v132_v18 = vadd.f32 %v131_v17, %v54_v15 }
  0xe4   :  { %v133_v19 = vpop.f32.mrf.mxu0 }
  0xe5   :  { %136 = vst [vmem:[%s237_s3] sm:$0xff] %v132_v18  ;;  %v134_v20 = vadd.f32 %v133_v19, %v58_v16 }
  0xe7   :  { %137 = vst [vmem:[%s237_s3 + $0x8] sm:$0xff] %v134_v20 }
  0xe8   :  { %142 = vsyncpa [#allocation3], 1 }
  0xe9   :  { %143 = vsyncpa [#allocation5], 1 }

</bundles_post_ra>
